<compile_context>
chip_gen: v7x
topology: tpu7x:2x2x1
jax: 0.10.0
libtpu: 0.0.40
codegen_flags: <defaults>
</compile_context>

<pallas_src>
import jax
import jax.numpy as jnp
from jax.experimental import pallas as pl
from jax.experimental.pallas import tpu as pltpu

# ---- StackCNN config (synthetic, deterministic) ----
LAYER_NUM = 3      # conv_layer0, conv_layer1, conv_layer2
IN_CH = 4
OUT_CH = 32
KSIZE = 3
STRIDE = 1
PAD = 1            # "same" padding for kernel_size=3
BATCH = 2
SEQ = 16

C_PAD = 128                      # lane width of packed contraction / outputs
TAP_STRIDE = OUT_CH              # lane offset between taps in the packed axis
BIAS_LANE = KSIZE * TAP_STRIDE   # 96: constant-1 lane that carries the bias
ROWS = BATCH * SEQ               # flattened (batch, seq) rows


def stackcnn_kernel(x_ref, w_ref, o_ref):
    """x_ref: (ROWS, C_PAD)        input rows, real channels in lanes [0, IN_CH)
       w_ref: (LAYER_NUM, C_PAD, C_PAD) packed im2col weights (bias in row BIAS_LANE)
       o_ref: (BATCH, C_PAD)       max-pooled output, real channels in [0, OUT_CH)."""
    row = jax.lax.broadcasted_iota(jnp.int32, (ROWS, C_PAD), 0)
    lane = jax.lax.broadcasted_iota(jnp.int32, (ROWS, C_PAD), 1)
    pos = row % SEQ                          # sequence position within a batch
    not_first = pos != 0                     # rows where in[l-1] exists
    not_last = pos != SEQ - 1                # rows where in[l+1] exists
    bias_one = jnp.where(lane == BIAS_LANE, 1.0, 0.0)   # constant-1 bias lane

    h = x_ref[...]
    for i in range(LAYER_NUM):               # static unroll (3 layers)
        # "same"-padded sequence shifts: sublane rolls (XLU) + boundary mask.
        # Rolling the flattened rows wraps across batches only at the rows
        # that get masked to zero anyway (the conv padding rows).
        prev = jnp.where(not_first, pltpu.roll(h, 1, axis=0), 0.0)        # in[l-1]
        nxt = jnp.where(not_last, pltpu.roll(h, ROWS - 1, axis=0), 0.0)   # in[l+1]
        # Pack the 3 taps into one 128-lane contraction axis (lane rolls are
        # XLU; lanes of h beyond the real channels are exact zeros).
        cols = (prev
                + pltpu.roll(h, TAP_STRIDE, axis=1)
                + pltpu.roll(nxt, 2 * TAP_STRIDE, axis=1)
                + bias_one)
        # One MXU matmul per layer; bias + ReLU fused into the epilogue.
        h = jnp.maximum(
            jnp.dot(cols, w_ref[i], preferred_element_type=jnp.float32), 0.0)

    # pool_layer: AdaptiveMaxPool1d(1).squeeze(-1) -> max over the sequence.
    o_ref[...] = jnp.max(h.reshape(BATCH, SEQ, C_PAD), axis=1)


def prepare_params(weights, biases):
    """Pack torch-layout (Cout, Cin, K) weights + (Cout,) biases into one
    (LAYER_NUM, 128, 128) im2col weight: tap k's input channels occupy rows
    [k*TAP_STRIDE, k*TAP_STRIDE+Cin), output channels occupy cols [0, Cout),
    bias sits in row BIAS_LANE.  Called once, outside the per-call path."""
    packed = []
    for w, b in zip(weights, biases):
        o, c, k = w.shape
        wp = jnp.zeros((C_PAD, C_PAD), jnp.float32)
        for kk in range(k):
            wp = wp.at[kk * TAP_STRIDE:kk * TAP_STRIDE + c, :o].set(
                jnp.transpose(w[:, :, kk]).astype(jnp.float32))
        wp = wp.at[BIAS_LANE, :o].set(b.astype(jnp.float32))
        packed.append(wp)
    return jnp.stack(packed)                 # (LAYER_NUM, 128, 128)


@jax.jit
def stack_cnn_forward(x_ncl, w_packed):
    """x_ncl: (N, C_in, L) — PyTorch Conv1d layout.  Returns (N, OUT_CH)."""
    n, c_in, l = x_ncl.shape
    # NCL -> flattened (N*L, C) rows, channels zero-padded to 128 lanes.
    x_rows = jnp.transpose(x_ncl, (0, 2, 1)).astype(jnp.float32)
    x_rows = x_rows.reshape(n * l, c_in)
    x_rows = jnp.pad(x_rows, ((0, 0), (0, C_PAD - c_in)))

    vmem = pl.BlockSpec(memory_space=pltpu.MemorySpace.VMEM)
    out_padded = pl.pallas_call(
        stackcnn_kernel,
        out_shape=jax.ShapeDtypeStruct((n, C_PAD), jnp.float32),
        in_specs=[vmem, vmem],
        out_specs=vmem,
    )(x_rows, w_packed)
    return out_padded[:, :OUT_CH]            # drop lane-padding channels


def ref_forward(x_ncl, weights, biases):
    """Pure-JAX reference mirroring torch Conv1d / ReLU / AdaptiveMaxPool1d(1)."""
    h = x_ncl.astype(jnp.float32)
    for w, b in zip(weights, biases):
        hp = jnp.pad(h, ((0, 0), (0, 0), (PAD, PAD)))
        l_out = hp.shape[2] - KSIZE + 1
        out = b[None, :, None]
        for k in range(KSIZE):
            out = out + jnp.einsum("nci,oc->noi", hp[:, :, k:k + l_out], w[:, :, k])
        h = jnp.maximum(out, 0.0)
    return jnp.max(h, axis=-1)


def init_params(key):
    """Deterministic init matching torch Conv1d parameter shapes."""
    weights, biases = [], []
    cin = IN_CH
    for _ in range(LAYER_NUM):
        key, kw, kb = jax.random.split(key, 3)
        bound = 1.0 / jnp.sqrt(cin * KSIZE)
        weights.append(jax.random.uniform(
            kw, (OUT_CH, cin, KSIZE), jnp.float32, -bound, bound))
        biases.append(jax.random.uniform(
            kb, (OUT_CH,), jnp.float32, -bound, bound))
        cin = OUT_CH
    return weights, biases


if __name__ == "__main__":
    key = jax.random.PRNGKey(0)
    key, kx = jax.random.split(key)
    x = jax.random.normal(kx, (BATCH, IN_CH, SEQ), jnp.float32)

    weights, biases = init_params(key)
    w_packed = prepare_params(weights, biases)   # hoisted: once, not per call

    out = stack_cnn_forward(x, w_packed)
    out = jax.block_until_ready(out)

    ref = ref_forward(x, weights, biases)
    assert out.shape == (BATCH, OUT_CH), out.shape
    assert jnp.allclose(out, ref, atol=1e-4, rtol=1e-4), "mismatch vs JAX reference"

    print("KERNEL_OK")
</pallas_src>

<mosaic_0001>
module attributes {stable_mosaic.version = 11 : i64} {
  func.func @stackcnn_kernel(%arg0: memref<32x128xf32, #tpu.memory_space<vmem>>, %arg1: memref<3x128x128xf32, #tpu.memory_space<vmem>>, %arg2: memref<2x128xf32, #tpu.memory_space<vmem>>) attributes {dimension_semantics = [], scalar_prefetch = 0 : i64, scratch_operands = 0 : i64, tpu.core_type = #tpu.core_type<tc>} {
    %0 = tpu.iota {dimensions = array<i32: 0>} : vector<32x128xi32>
    %1 = tpu.iota {dimensions = array<i32: 1>} : vector<32x128xi32>
    %c16_i32 = arith.constant 16 : i32
    %c0_i32 = arith.constant 0 : i32
    %2 = arith.cmpi eq, %c16_i32, %c0_i32 : i32
    %c1_i32 = arith.constant 1 : i32
    %3 = arith.select %2, %c1_i32, %c16_i32 : i32
    %4 = vector.broadcast %3 : i32 to vector<32x128xi32>
    %5 = arith.remsi %0, %4 : vector<32x128xi32>
    %c0_i32_0 = arith.constant 0 : i32
    %6 = vector.broadcast %c0_i32_0 : i32 to vector<32x128xi32>
    %7 = arith.cmpi ne, %5, %6 : vector<32x128xi32>
    %c0_i32_1 = arith.constant 0 : i32
    %8 = vector.broadcast %c0_i32_1 : i32 to vector<32x128xi32>
    %9 = arith.cmpi slt, %5, %8 : vector<32x128xi32>
    %c0_i32_2 = arith.constant 0 : i32
    %10 = arith.cmpi slt, %3, %c0_i32_2 : i32
    %11 = vector.broadcast %10 : i1 to vector<32x128xi1>
    %12 = vector.broadcast %11 : vector<32x128xi1> to vector<32x128xi1>
    %13 = arith.xori %9, %12 : vector<32x128xi1>
    %14 = arith.andi %13, %7 : vector<32x128xi1>
    %15 = vector.broadcast %3 : i32 to vector<32x128xi32>
    %16 = arith.addi %5, %15 : vector<32x128xi32>
    %17 = arith.select %14, %16, %5 : vector<32x128xi1>, vector<32x128xi32>
    %c0_i32_3 = arith.constant 0 : i32
    %18 = vector.broadcast %c0_i32_3 : i32 to vector<32x128xi32>
    %19 = arith.cmpi ne, %17, %18 : vector<32x128xi32>
    %c15_i32 = arith.constant 15 : i32
    %20 = vector.broadcast %c15_i32 : i32 to vector<32x128xi32>
    %21 = arith.cmpi ne, %17, %20 : vector<32x128xi32>
    %c96_i32 = arith.constant 96 : i32
    %22 = vector.broadcast %c96_i32 : i32 to vector<32x128xi32>
    %23 = arith.cmpi eq, %1, %22 : vector<32x128xi32>
    %cst = arith.constant 1.000000e+00 : f32
    %cst_4 = arith.constant 0.000000e+00 : f32
    %24 = vector.broadcast %cst : f32 to vector<32x128xf32>
    %25 = vector.broadcast %cst_4 : f32 to vector<32x128xf32>
    %26 = arith.select %23, %24, %25 : vector<32x128xi1>, vector<32x128xf32>
    %c0 = arith.constant 0 : index
    %c0_5 = arith.constant 0 : index
    %27 = vector.load %arg0[%c0, %c0_5] : memref<32x128xf32, #tpu.memory_space<vmem>>, vector<32x128xf32>
    %c1_i32_6 = arith.constant 1 : i32
    %28 = tpu.dynamic_rotate %27 by %c1_i32_6 dim 0 : vector<32x128xf32>, i32 -> vector<32x128xf32>
    %cst_7 = arith.constant 0.000000e+00 : f32
    %29 = vector.broadcast %cst_7 : f32 to vector<32x128xf32>
    %30 = arith.select %19, %28, %29 : vector<32x128xi1>, vector<32x128xf32>
    %c31_i32 = arith.constant 31 : i32
    %31 = tpu.dynamic_rotate %27 by %c31_i32 dim 0 : vector<32x128xf32>, i32 -> vector<32x128xf32>
    %cst_8 = arith.constant 0.000000e+00 : f32
    %32 = vector.broadcast %cst_8 : f32 to vector<32x128xf32>
    %33 = arith.select %21, %31, %32 : vector<32x128xi1>, vector<32x128xf32>
    %c32_i32 = arith.constant 32 : i32
    %34 = tpu.dynamic_rotate %27 by %c32_i32 dim 1 : vector<32x128xf32>, i32 -> vector<32x128xf32>
    %35 = arith.addf %30, %34 : vector<32x128xf32>
    %c64_i32 = arith.constant 64 : i32
    %36 = tpu.dynamic_rotate %33 by %c64_i32 dim 1 : vector<32x128xf32>, i32 -> vector<32x128xf32>
    %37 = arith.addf %35, %36 : vector<32x128xf32>
    %38 = arith.addf %37, %26 : vector<32x128xf32>
    %c0_9 = arith.constant 0 : index
    %c0_10 = arith.constant 0 : index
    %c0_11 = arith.constant 0 : index
    %39 = vector.load %arg1[%c0_9, %c0_10, %c0_11] : memref<3x128x128xf32, #tpu.memory_space<vmem>>, vector<1x128x128xf32>
    %40 = vector.shape_cast %39 : vector<1x128x128xf32> to vector<128x128xf32>
    %cst_12 = arith.constant dense<0.000000e+00> : vector<32x128xf32>
    %41 = tpu.matmul %38, %40, %cst_12 {dimension_numbers = #tpu.dot_dimension_numbers<[1], [0], [0], [1], [0, 0, 1, 1], [], []>} : vector<32x128xf32>, vector<128x128xf32>, vector<32x128xf32> -> vector<32x128xf32>
    %cst_13 = arith.constant 0.000000e+00 : f32
    %42 = vector.broadcast %cst_13 : f32 to vector<32x128xf32>
    %43 = arith.maximumf %41, %42 : vector<32x128xf32>
    %c1_i32_14 = arith.constant 1 : i32
    %44 = tpu.dynamic_rotate %43 by %c1_i32_14 dim 0 : vector<32x128xf32>, i32 -> vector<32x128xf32>
    %cst_15 = arith.constant 0.000000e+00 : f32
    %45 = vector.broadcast %cst_15 : f32 to vector<32x128xf32>
    %46 = arith.select %19, %44, %45 : vector<32x128xi1>, vector<32x128xf32>
    %c31_i32_16 = arith.constant 31 : i32
    %47 = tpu.dynamic_rotate %43 by %c31_i32_16 dim 0 : vector<32x128xf32>, i32 -> vector<32x128xf32>
    %cst_17 = arith.constant 0.000000e+00 : f32
    %48 = vector.broadcast %cst_17 : f32 to vector<32x128xf32>
    %49 = arith.select %21, %47, %48 : vector<32x128xi1>, vector<32x128xf32>
    %c32_i32_18 = arith.constant 32 : i32
    %50 = tpu.dynamic_rotate %43 by %c32_i32_18 dim 1 : vector<32x128xf32>, i32 -> vector<32x128xf32>
    %51 = arith.addf %46, %50 : vector<32x128xf32>
    %c64_i32_19 = arith.constant 64 : i32
    %52 = tpu.dynamic_rotate %49 by %c64_i32_19 dim 1 : vector<32x128xf32>, i32 -> vector<32x128xf32>
    %53 = arith.addf %51, %52 : vector<32x128xf32>
    %54 = arith.addf %53, %26 : vector<32x128xf32>
    %c1 = arith.constant 1 : index
    %c0_20 = arith.constant 0 : index
    %c0_21 = arith.constant 0 : index
    %55 = vector.load %arg1[%c1, %c0_20, %c0_21] : memref<3x128x128xf32, #tpu.memory_space<vmem>>, vector<1x128x128xf32>
    %56 = vector.shape_cast %55 : vector<1x128x128xf32> to vector<128x128xf32>
    %cst_22 = arith.constant dense<0.000000e+00> : vector<32x128xf32>
    %57 = tpu.matmul %54, %56, %cst_22 {dimension_numbers = #tpu.dot_dimension_numbers<[1], [0], [0], [1], [0, 0, 1, 1], [], []>} : vector<32x128xf32>, vector<128x128xf32>, vector<32x128xf32> -> vector<32x128xf32>
    %cst_23 = arith.constant 0.000000e+00 : f32
    %58 = vector.broadcast %cst_23 : f32 to vector<32x128xf32>
    %59 = arith.maximumf %57, %58 : vector<32x128xf32>
    %c1_i32_24 = arith.constant 1 : i32
    %60 = tpu.dynamic_rotate %59 by %c1_i32_24 dim 0 : vector<32x128xf32>, i32 -> vector<32x128xf32>
    %cst_25 = arith.constant 0.000000e+00 : f32
    %61 = vector.broadcast %cst_25 : f32 to vector<32x128xf32>
    %62 = arith.select %19, %60, %61 : vector<32x128xi1>, vector<32x128xf32>
    %c31_i32_26 = arith.constant 31 : i32
    %63 = tpu.dynamic_rotate %59 by %c31_i32_26 dim 0 : vector<32x128xf32>, i32 -> vector<32x128xf32>
    %cst_27 = arith.constant 0.000000e+00 : f32
    %64 = vector.broadcast %cst_27 : f32 to vector<32x128xf32>
    %65 = arith.select %21, %63, %64 : vector<32x128xi1>, vector<32x128xf32>
    %c32_i32_28 = arith.constant 32 : i32
    %66 = tpu.dynamic_rotate %59 by %c32_i32_28 dim 1 : vector<32x128xf32>, i32 -> vector<32x128xf32>
    %67 = arith.addf %62, %66 : vector<32x128xf32>
    %c64_i32_29 = arith.constant 64 : i32
    %68 = tpu.dynamic_rotate %65 by %c64_i32_29 dim 1 : vector<32x128xf32>, i32 -> vector<32x128xf32>
    %69 = arith.addf %67, %68 : vector<32x128xf32>
    %70 = arith.addf %69, %26 : vector<32x128xf32>
    %c2 = arith.constant 2 : index
    %c0_30 = arith.constant 0 : index
    %c0_31 = arith.constant 0 : index
    %71 = vector.load %arg1[%c2, %c0_30, %c0_31] : memref<3x128x128xf32, #tpu.memory_space<vmem>>, vector<1x128x128xf32>
    %72 = vector.shape_cast %71 : vector<1x128x128xf32> to vector<128x128xf32>
    %cst_32 = arith.constant dense<0.000000e+00> : vector<32x128xf32>
    %73 = tpu.matmul %70, %72, %cst_32 {dimension_numbers = #tpu.dot_dimension_numbers<[1], [0], [0], [1], [0, 0, 1, 1], [], []>} : vector<32x128xf32>, vector<128x128xf32>, vector<32x128xf32> -> vector<32x128xf32>
    %cst_33 = arith.constant 0.000000e+00 : f32
    %74 = vector.broadcast %cst_33 : f32 to vector<32x128xf32>
    %75 = arith.maximumf %73, %74 : vector<32x128xf32>
    %76 = vector.shape_cast %75 : vector<32x128xf32> to vector<2x16x128xf32>
    %cst_34 = arith.constant dense<0xFF800000> : vector<2x128xf32>
    %77 = vector.multi_reduction <maximumf>, %76, %cst_34 [1] : vector<2x16x128xf32> to vector<2x128xf32>
    %c0_35 = arith.constant 0 : index
    %c0_36 = arith.constant 0 : index
    %78 = vector.load %arg2[%c0_35, %c0_36] : memref<2x128xf32, #tpu.memory_space<vmem>>, vector<2x128xf32>
    tpu.vector_store %arg2[%c0_35, %c0_36], %77 {strides = array<i32>} : memref<2x128xf32, #tpu.memory_space<vmem>>, vector<2x128xf32>,
    return
  }
}

</mosaic_0001>

<bundles_post_ra>
// kernel: stack_cnn_forward.1
= control target key start
LH: loop header
LB: loop body
LE: loop exit
PB: predicated region body
PF: predicated region fallthrough
CT: control target
= control target key end

     0   :  { %7 = vsyncpa [#allocation3], 0  ;;  %s1143_s0 = inlined_call_operand.vmem [shape: f32[32,128], index: 0, kind: input, shape index: {}]   ;;  %s1144_s1 = inlined_call_operand.hbm [shape: f32[3,128,128], index: 1, kind: input, shape index: {}]   ;;  %s1145_s2 = inlined_call_operand.hbm [shape: f32[2,128], index: 2, kind: output, shape index: {}]  }
   0x1   :  { %8 = vsyncpa [#allocation4], 0  ;;  %s946_s9 = smov [#allocation2]   ;;  %s898_s13 = scalar_lea.hbm %s1144_s1, 6144 }
   0x2   :  { %s16_s10 = sshll.u32 %s946_s9, 4  ;;  %p899_p0 = scmp.ne.s32.totalorder %s1144_s1, %s898_s13  ;;  %s17_s10 = int_to_ptr.vmem [resolvable:$true] %s16_s10 }
   0x3   :  { %p902_p1 = scmp.lt.u32.totalorder %s898_s13, %s1144_s1 }
   0x5   :  { %p904_p2 = pnand %p902_p1, %p899_p0 }
   0x7   :  { %907 = shalt.err (!%p904_p2)
}
   0x8   :  { %s908_s18 = scalar_lea.vmem %s17_s10, 6144  ;;  %p913_p4 = scmp.lt.s32.totalorder %s17_s10, %s17_s10 }
   0x9   :  { %p909_p3 = scmp.ne.s32.totalorder %s17_s10, %s908_s18  ;;  %p914_p5 = scmp.lt.s32.totalorder %s908_s18, %s908_s18 }
   0xb   :  { %p915_p6 = por %p914_p5, %p913_p4 }
   0xd   :  { %p916_p7 = pnand %p915_p6, %p909_p3 }
   0xf   :  { %919 = shalt.err (!%p916_p7)
}
  0x10   :  { %s947_s19 = smov 128   ;;  %s948_s20 = smov 8  }
  0x11   :  { %22 = dma.hbm_to_vmem [thread:$0]  %s1144_s1, 6144, %s17_s10, [#allocation3], %s947_s19, %s947_s19, %s948_s20  }
  0x12   :  { %942 = dma.done.wait [#allocation3], 6144  }
  0x13   :  { %943 = vsyncadd [#allocation3], 4294961152  ;;  %v26_v0 = vlaneseq  ;;  %v94_v5 = vld [vmem:[%s1143_s0 + $0x18] sm:$0xff]  ;;  %v91_v6 = vld [vmem:[%s1143_s0] sm:$0xff]  ;;  %s949_s28 = smov 32   ;;  %s952_s3 = smov [#allocation5]  }
  0x14   :  { %v92_v7 = vld [vmem:[%s1143_s0 + $0x8] sm:$0xff]  ;;  %127 = vrot.lane.b32.xlu1 %v94_v5, %s949_s28  ;;  %v98_v8 = vrot.slane %v94_v5, 7  ;;  %121 = vrot.lane.b32.xlu0 %v91_v6, %s949_s28  ;;  %v108_v9 = vrot.slane %v91_v6, 1  ;;  %v93_v10 = vld [vmem:[%s1143_s0 + $0x10] sm:$0xff]  ;;  %v149_v12 = vld [vmem:[#allocation2] sm:$0xff]  ;;  %v95_v13 = vrot.slane %v91_v6, 7 }
  0x15   :  { %v981_v1 = vshrl.u32 %v26_v0, 7  ;;  %v109_v14 = vrot.slane %v92_v7, 1  ;;  %v97_v15 = vrot.slane %v93_v10, 7  ;;  %v110_v16 = vrot.slane %v93_v10, 1  ;;  %v150_v17 = vld [vmem:[#allocation2 + $0x8] sm:$0xff]  ;;  %v151_v18 = vld [vmem:[#allocation2 + $0x10] sm:$0xff] }
  0x16   :  { %v111_v19 = vrot.slane %v94_v5, 1  ;;  %v96_v20 = vrot.slane %v92_v7, 7  ;;  %v779_v22 = vpack.c.bf16 %v150_v17, %v149_v12  ;;  %v152_v23 = vld [vmem:[#allocation2 + $0x18] sm:$0xff]  ;;  %s950_s0 = smov 64   ;;  %v153_v27 = vld [vmem:[#allocation2 + $0x20] sm:$0xff]  ;;  %v154_v28 = vld [vmem:[#allocation2 + $0x28] sm:$0xff] }
  0x17   :  { %v28_v2 = vadd.s32 8, %v981_v1  ;;  %v30_v3 = vadd.s32 24, %v981_v1  ;;  %vm112_vm0 = vcmp.lt.s32.totalorder %v981_v1, 7  ;;  %vm99_vm1 = vcmp.lt.s32.totalorder %v981_v1, 1  ;;  %v155_v37 = vld [vmem:[#allocation2 + $0x30] sm:$0xff]  ;;  %v156_v38 = vld [vmem:[#allocation2 + $0x38] sm:$0xff] }
  0x18   :  { %v115_v24 = vsel %vm112_vm0, %v108_v9, %v109_v14  ;;  %v114_v25 = vsel %vm112_vm0, %v109_v14, %v110_v16  ;;  %123 = vrot.lane.b32.xlu0 %v92_v7, %s949_s28  ;;  %v783_v26 = vpack.c.bf16 %v152_v23, %v151_v18  ;;  %780 = vmatprep.subr.bf16.mxu0 %v779_v22  ;;  %v157_v42 = vld [vmem:[#allocation2 + $0x40] sm:$0xff]  ;;  %v158_v43 = vld [vmem:[#allocation2 + $0x48] sm:$0xff]  ;;  %v159_v45 = vld [vmem:[#allocation2 + $0x50] sm:$0xff]  ;;  %v37_v54 = vand.u32 15, %v981_v1  ;;  %s596_s4 = sshll.u32 %s952_s3, 4  ;;  %s597_s4 = int_to_ptr.vmem [resolvable:$true] %s596_s4 }
  0x19   :  { %v44_v4 = vand.u32 15, %v28_v2  ;;  %v58_v11 = vand.u32 15, %v30_v3  ;;  %133 = vrot.lane.b32.xlu1 %v115_v24, %s950_s0  ;;  %v1015_v30 = vsel %vm99_vm1, %v97_v15, %v98_v8  ;;  %v103_v31 = vsel %vm99_vm1, %v98_v8, %v95_v13  ;;  %782 = vmatpush3.bf16.msra.mxu0 %v779_v22  ;;  %v160_v46 = vld [vmem:[#allocation2 + $0x58] sm:$0xff]  ;;  %v161_v48 = vld [vmem:[#allocation2 + $0x60] sm:$0xff]  ;;  %v162_v49 = vld [vmem:[#allocation2 + $0x68] sm:$0xff]  ;;  %s920_s5 = scalar_lea.vmem %s597_s4, 32  ;;  %p925_p9 = scmp.lt.s32.totalorder %s597_s4, %s597_s4 }
  0x1a   :  { %v116_v33 = vsel %vm112_vm0, %v111_v19, %v108_v9  ;;  %v102_v34 = vsel %vm99_vm1, %v95_v13, %v96_v20  ;;  %784 = vmatprep.subr.bf16.mxu0 %v783_v26  ;;  %v787_v35 = vpack.c.bf16 %v154_v28, %v153_v27  ;;  %v101_v36 = vsel %vm99_vm1, %v96_v20, %v97_v15  ;;  %v163_v51 = vld [vmem:[#allocation2 + $0x70] sm:$0xff]  ;;  %v164_v52 = vld [vmem:[#allocation2 + $0x78] sm:$0xff]  ;;  %v307_v22 = vld [vmem:[#allocation2 + $0x80] sm:$0xff]  ;;  %p921_p8 = scmp.ne.s32.totalorder %s597_s4, %s920_s5  ;;  %p926_p10 = scmp.lt.s32.totalorder %s920_s5, %s920_s5 }
  0x1b   :  { %vm1001_vm2 = vcmp.ne.s32.totalorder %v44_v4, 15  ;;  %vm1019_vm3 = vcmp.ne.s32.totalorder %v58_v11, 15  ;;  %v113_v39 = vsel %vm112_vm0, %v110_v16, %v111_v19  ;;  %v791_v41 = vpack.c.bf16 %v156_v38, %v155_v37  ;;  %v308_v23 = vld [vmem:[#allocation2 + $0x88] sm:$0xff]  ;;  %v309_v24 = vld [vmem:[#allocation2 + $0x90] sm:$0xff]  ;;  %v311_v28 = vld [vmem:[#allocation2 + $0xa0] sm:$0xff] }
  0x1c   :  { %v118_v29 = vsel %vm1001_vm2, %v114_v25, 0.0  ;;  %125 = vrot.lane.b32.xlu0 %v93_v10, %s949_s28  ;;  %v120_v40 = vsel %vm1019_vm3, %v116_v33, 0.0  ;;  %v795_v44 = vpack.c.bf16 %v158_v43, %v157_v42  ;;  %v799_v47 = vpack.c.bf16 %v160_v46, %v159_v45  ;;  %v314_v33 = vld [vmem:[#allocation2 + $0xb8] sm:$0xff]  ;;  %v317_v38 = vld [vmem:[#allocation2 + $0xd0] sm:$0xff]  ;;  %v320_v42 = vld [vmem:[#allocation2 + $0xe8] sm:$0xff]  ;;  %p927_p11 = por %p926_p10, %p925_p9 }
  0x1d   :  { %135 = vrot.lane.b32.xlu1 %v118_v29, %s950_s0  ;;  %786 = vmatpush3.bf16.msra.mxu0 %v783_v26  ;;  %v803_v50 = vpack.c.bf16 %v162_v49, %v161_v48  ;;  %v807_v53 = vpack.c.bf16 %v164_v52, %v163_v51  ;;  %vm1038_vm4 = vcmp.ne.s32.totalorder %v37_v54, 0  ;;  %v29_v56 = vadd.s32 16, %v981_v1  ;;  %v310_v26 = vld [vmem:[#allocation2 + $0x98] sm:$0xff]  ;;  %v312_v29 = vld [vmem:[#allocation2 + $0xa8] sm:$0xff] }
  0x1e   :  { %788 = vmatprep.subr.bf16.mxu0 %v787_v35  ;;  %v32_v57 = vand.u32 127, %v26_v0  ;;  %v104_v60 = vsel %vm1038_vm4, %v103_v31, 0.0  ;;  %v951_v3 = vmov 0.0   ;;  %v811_v25 = vpack.c.bf16 %v308_v23, %v307_v22  ;;  %v313_v31 = vld [vmem:[#allocation2 + $0xb0] sm:$0xff]  ;;  %v322_v45 = vld [vmem:[#allocation2 + $0xf8] sm:$0xff]  ;;  %p928_p12 = pnand %p927_p11, %p921_p8 }
  0x1f   :  { %v51_v61 = vand.u32 15, %v29_v56  ;;  %v815_v27 = vpack.c.bf16 %v310_v26, %v309_v24  ;;  %vm586_vm7 = vcmask 1041409  }
  0x20   :  { %137 = vrot.lane.b32.xlu0 %v113_v39, %s950_s0  ;;  %vm89_vm5 = vcmp.eq.s32.totalorder %v32_v57, 96  ;;  %812 = vmatprep.subr.bf16.mxu1 %v811_v25  ;;  %v318_v39 = vld [vmem:[#allocation2 + $0xd8] sm:$0xff] }
  0x21   :  { %139 = vrot.lane.b32.xlu1 %v120_v40, %s950_s0  ;;  %790 = vmatpush3.bf16.msra.mxu0 %v787_v35  ;;  %v1046_v4 = vsel %vm89_vm5, 1.0, %v951_v3  ;;  %vm1048_vm6 = vcmp.ne.s32.totalorder %v51_v61, 0  ;;  %v315_v35 = vld [vmem:[#allocation2 + $0xc0] sm:$0xff]  ;;  %v831_v40 = vpack.c.bf16 %v318_v39, %v317_v38  ;;  %v466_v38 = vld [vmem:[#allocation2 + $0x108] sm:$0xff]  ;;  %v467_v39 = vld [vmem:[#allocation2 + $0x110] sm:$0xff] }
  0x22   :  { %792 = vmatprep.subr.bf16.mxu0 %v791_v41  ;;  %v106_v8 = vsel %vm1048_vm6, %v101_v36, 0.0  ;;  %814 = vmatpush3.bf16.msra.mxu1 %v811_v25  ;;  %v316_v36 = vld [vmem:[#allocation2 + $0xc8] sm:$0xff] }
  0x23   :  { %816 = vmatprep.subr.bf16.mxu1 %v815_v27  ;;  %v827_v37 = vpack.c.bf16 %v316_v36, %v315_v35 }
  0x25   :  { %794 = vmatpush3.bf16.msra.mxu0 %v791_v41  ;;  %v319_v41 = vld [vmem:[#allocation2 + $0xe0] sm:$0xff] }
  0x26   :  { %796 = vmatprep.subr.bf16.mxu0 %v795_v44  ;;  %818 = vmatpush3.bf16.msra.mxu1 %v815_v27  ;;  %v835_v43 = vpack.c.bf16 %v320_v42, %v319_v41  ;;  %v468_v41 = vld [vmem:[#allocation2 + $0x118] sm:$0xff] }
  0x27   :  { %v847_v42 = vpack.c.bf16 %v468_v41, %v467_v39 }
  0x29   :  { %798 = vmatpush3.bf16.msra.mxu0 %v795_v44  ;;  %v321_v44 = vld [vmem:[#allocation2 + $0xf0] sm:$0xff] }
  0x2a   :  { %800 = vmatprep.subr.bf16.mxu0 %v799_v47  ;;  %v839_v46 = vpack.c.bf16 %v322_v45, %v321_v44  ;;  %v470_v44 = vld [vmem:[#allocation2 + $0x128] sm:$0xff] }
  0x2d   :  { %802 = vmatpush3.bf16.msra.mxu0 %v799_v47 }
  0x2e   :  { %804 = vmatprep.subr.bf16.mxu0 %v803_v50 }
  0x31   :  { %806 = vmatpush3.bf16.msra.mxu0 %v803_v50 }
  0x32   :  { %808 = vmatprep.subr.bf16.mxu0 %v807_v53 }
  0x35   :  { %810 = vmatpush3.bf16.msra.mxu0 %v807_v53 }
  0x86   :  { %v128_v58 = vpop.permute.xlu1 %127  ;;  %v122_v59 = vpop.permute.xlu0 %121 }
  0x87   :  { %v129_v62 = vadd.f32 %v122_v59, %v104_v60  ;;  %v132_v12 = vadd.f32 %v128_v58, %v1015_v30  ;;  %v819_v30 = vpack.c.bf16 %v312_v29, %v311_v28 }
  0x89   :  { %820 = vmatprep.subr.bf16.mxu1 %v819_v30 }
  0x8a   :  { %v124_v63 = vpop.permute.xlu0 %123  ;;  %822 = vmatpush3.bf16.msra.mxu1 %v819_v30 }
  0x8b   :  { %v134_v2 = vpop.permute.xlu1 %133  ;;  %v130_v7 = vadd.f32 %v124_v63, %v102_v34  ;;  %v823_v34 = vpack.c.bf16 %v314_v33, %v313_v31 }
  0x8c   :  { %v141_v5 = vadd.f32 %v134_v2, %v129_v62 }
  0x8d   :  { %824 = vmatprep.subr.bf16.mxu1 %v823_v34 }
  0x8e   :  { %v145_v0 = vadd.f32 %v141_v5, %v1046_v4  ;;  %v126_v9 = vpop.permute.xlu0 %125  ;;  %826 = vmatpush3.bf16.msra.mxu1 %v823_v34 }
  0x8f   :  { %v136_v10 = vpop.permute.xlu1 %135  ;;  %v131_v13 = vadd.f32 %v126_v9, %v106_v8  ;;  %828 = vmatprep.subr.bf16.mxu1 %v827_v37 }
  0x90   :  { %v142_v11 = vadd.f32 %v136_v10, %v130_v7  ;;  %697 = vmatprep.mubr.f32.mxu0 %v145_v0 }
  0x92   :  { %v146_v14 = vadd.f32 %v142_v11, %v1046_v4  ;;  %v138_v15 = vpop.permute.xlu0 %137  ;;  %830 = vmatpush3.bf16.msra.mxu1 %v827_v37  ;;  %v465_v37 = vld [vmem:[#allocation2 + $0x100] sm:$0xff] }
  0x93   :  { %v140_v16 = vpop.permute.xlu1 %139  ;;  %v143_v17 = vadd.f32 %v138_v15, %v131_v13  ;;  %832 = vmatprep.subr.bf16.mxu1 %v831_v40 }
  0x94   :  { %v144_v18 = vadd.f32 %v140_v16, %v132_v12  ;;  %698 = vmatmul.mubr.f32.vlgmr.msra.gmra.mrb[0].mxu0 %v146_v14 }
  0x95   :  { %v147_v19 = vadd.f32 %v143_v17, %v1046_v4 }
  0x96   :  { %v148_v20 = vadd.f32 %v144_v18, %v1046_v4  ;;  %834 = vmatpush3.bf16.msra.mxu1 %v831_v40  ;;  %v843_v40 = vpack.c.bf16 %v466_v38, %v465_v37 }
  0x97   :  { %700 = vmatprep.mubr.f32.mxu0 %v147_v19  ;;  %836 = vmatprep.subr.bf16.mxu1 %v835_v43 }
  0x98   :  { %701 = vmatmul.mubr.f32.gmra.mrb[2].mxu0 %v148_v20  ;;  %844 = vmatprep.subr.bf16.mxu0 %v843_v40 }
  0x99   :  { %846 = vmatpush3.bf16.msra.mxu0 %v843_v40 }
  0x9a   :  { %838 = vmatpush3.bf16.msra.mxu1 %v835_v43  ;;  %v469_v43 = vld [vmem:[#allocation2 + $0x120] sm:$0xff]  ;;  %848 = vmatprep.subr.bf16.mxu0 %v847_v42 }
  0x9b   :  { %840 = vmatprep.subr.bf16.mxu1 %v839_v46  ;;  %v851_v45 = vpack.c.bf16 %v470_v44, %v469_v43 }
  0x9d   :  { %850 = vmatpush3.bf16.msra.mxu0 %v847_v42 }
  0x9e   :  { %842 = vmatpush3.bf16.msra.mxu1 %v839_v46  ;;  %v471_v46 = vld [vmem:[#allocation2 + $0x130] sm:$0xff]  ;;  %852 = vmatprep.subr.bf16.mxu0 %v851_v45 }
  0x9f   :  { %875 = vmatprep.subr.bf16.mxu1 %v843_v40 }
  0xa1   :  { %854 = vmatpush3.bf16.msra.mxu0 %v851_v45 }
 0x167   :  { %v699_v47 = vpop.f32.mrb[0].mxu0 }
 0x168   :  { %v251_v48 = vmax.f32 %v699_v47, 0.0  ;;  %v231_v49 = vpop.f32.mrb[1].mxu0  ;;  %v472_v47 = vld [vmem:[#allocation2 + $0x138] sm:$0xff] }
 0x169   :  { %v250_v50 = vmax.f32 %v231_v49, 0.0  ;;  %v473_v49 = vld [vmem:[#allocation2 + $0x140] sm:$0xff] }
 0x16a   :  { %v255_v51 = vrot.slane %v251_v48, 7  ;;  %v267_v52 = vrot.slane %v251_v48, 1  ;;  %280 = vrot.lane.b32.xlu1 %v251_v48, %s949_s28  ;;  %v855_v48 = vpack.c.bf16 %v472_v47, %v471_v46 }
 0x16b   :  { %v254_v53 = vrot.slane %v250_v50, 7  ;;  %v266_v54 = vrot.slane %v250_v50, 1  ;;  %278 = vrot.lane.b32.xlu0 %v250_v50, %s949_s28  ;;  %v702_v56 = vpop.f32.mrb[2].mxu0  ;;  %v474_v50 = vld [vmem:[#allocation2 + $0x148] sm:$0xff] }
 0x16c   :  { %v253_v57 = vmax.f32 %v702_v56, 0.0  ;;  %v241_v58 = vpop.f32.mrb[3].mxu0  ;;  %856 = vmatprep.subr.bf16.mxu0 %v855_v48  ;;  %v477_v56 = vld [vmem:[#allocation2 + $0x160] sm:$0xff] }
 0x16d   :  { %v272_v59 = vsel %vm112_vm0, %v266_v54, %v267_v52  ;;  %v260_v60 = vsel %vm99_vm1, %v254_v53, %v255_v51  ;;  %v252_v61 = vmax.f32 %v241_v58, 0.0  ;;  %858 = vmatpush3.bf16.msra.mxu0 %v855_v48 }
 0x16e   :  { %v257_v62 = vrot.slane %v253_v57, 7  ;;  %v269_v63 = vrot.slane %v253_v57, 1  ;;  %284 = vrot.lane.b32.xlu1 %v253_v57, %s949_s28  ;;  %v478_v57 = vld [vmem:[#allocation2 + $0x168] sm:$0xff] }
 0x16f   :  { %290 = vrot.lane.b32.xlu0 %v272_v59, %s950_s0  ;;  %v256_v2 = vrot.slane %v252_v61, 7  ;;  %v268_v3 = vrot.slane %v252_v61, 1  ;;  %v867_v58 = vpack.c.bf16 %v478_v57, %v477_v56 }
 0x170   :  { %v273_v5 = vsel %vm112_vm0, %v269_v63, %v266_v54  ;;  %v261_v7 = vsel %vm99_vm1, %v257_v62, %v254_v53  ;;  %v476_v53 = vld [vmem:[#allocation2 + $0x158] sm:$0xff] }
 0x171   :  { %v271_v0 = vsel %vm112_vm0, %v267_v52, %v268_v3  ;;  %v270_v8 = vsel %vm112_vm0, %v268_v3, %v269_v63  ;;  %v258_v10 = vsel %vm99_vm1, %v256_v2, %v257_v62  ;;  %v259_v11 = vsel %vm99_vm1, %v255_v51, %v256_v2  ;;  %v475_v52 = vld [vmem:[#allocation2 + $0x150] sm:$0xff] }
 0x172   :  { %v275_v9 = vsel %vm1001_vm2, %v271_v0, 0.0  ;;  %v277_v12 = vsel %vm1019_vm3, %v273_v5, 0.0  ;;  %v262_v15 = vsel %vm1038_vm4, %v261_v7, 0.0  ;;  %v264_v25 = vsel %vm1048_vm6, %v259_v11, 0.0 }
 0x173   :  { %282 = vrot.lane.b32.xlu0 %v252_v61, %s949_s28  ;;  %292 = vrot.lane.b32.xlu1 %v275_v9, %s950_s0  ;;  %v859_v51 = vpack.c.bf16 %v474_v50, %v473_v49  ;;  %v863_v54 = vpack.c.bf16 %v476_v53, %v475_v52  ;;  %v480_v61 = vld [vmem:[#allocation2 + $0x178] sm:$0xff] }
 0x175   :  { %860 = vmatprep.subr.bf16.mxu0 %v859_v51 }
 0x176   :  { %862 = vmatpush3.bf16.msra.mxu0 %v859_v51 }
 0x177   :  { %294 = vrot.lane.b32.xlu0 %v270_v8, %s950_s0  ;;  %296 = vrot.lane.b32.xlu1 %v277_v12, %s950_s0 }
 0x178   :  { %864 = vmatprep.subr.bf16.mxu0 %v863_v54 }
 0x17a   :  { %866 = vmatpush3.bf16.msra.mxu0 %v863_v54 }
 0x17b   :  { %868 = vmatprep.subr.bf16.mxu0 %v867_v58 }
 0x17e   :  { %870 = vmatpush3.bf16.msra.mxu0 %v867_v58 }
 0x1dc   :  { %v281_v13 = vpop.permute.xlu1 %280 }
 0x1dd   :  { %v279_v14 = vpop.permute.xlu0 %278  ;;  %v287_v22 = vadd.f32 %v281_v13, %v260_v60  ;;  %v479_v60 = vld [vmem:[#allocation2 + $0x170] sm:$0xff] }
 0x1de   :  { %v286_v16 = vadd.f32 %v279_v14, %v262_v15  ;;  %v871_v2 = vpack.c.bf16 %v480_v61, %v479_v60 }
 0x1e0   :  { %v285_v18 = vpop.permute.xlu1 %284  ;;  %872 = vmatprep.subr.bf16.mxu0 %v871_v2 }
 0x1e1   :  { %v291_v17 = vpop.permute.xlu0 %290  ;;  %v289_v28 = vadd.f32 %v285_v18, %v258_v10  ;;  %874 = vmatpush3.bf16.msra.mxu0 %v871_v2 }
 0x1e2   :  { %v298_v19 = vadd.f32 %v291_v17, %v286_v16 }
 0x1e4   :  { %v302_v20 = vadd.f32 %v298_v19, %v1046_v4 }
 0x1e5   :  { %v283_v23 = vpop.permute.xlu0 %282  ;;  %v293_v24 = vpop.permute.xlu1 %292 }
 0x1e6   :  { %735 = vmatprep.mubr.f32.mxu1 %v302_v20  ;;  %v299_v26 = vadd.f32 %v293_v24, %v287_v22  ;;  %v288_v27 = vadd.f32 %v283_v23, %v264_v25 }
 0x1e8   :  { %v303_v29 = vadd.f32 %v299_v26, %v1046_v4 }
 0x1e9   :  { %v295_v30 = vpop.permute.xlu0 %294  ;;  %v297_v33 = vpop.permute.xlu1 %296 }
 0x1ea   :  { %v300_v31 = vadd.f32 %v295_v30, %v288_v27  ;;  %v301_v34 = vadd.f32 %v297_v33, %v289_v28  ;;  %736 = vmatmul.mubr.f32.vlgmr.msra.gmra.mrb[0].mxu1 %v303_v29 }
 0x1eb   :  { %883 = vmatpush3.bf16.msra.mxu1 %v843_v40 }
 0x1ec   :  { %v304_v35 = vadd.f32 %v300_v31, %v1046_v4  ;;  %v305_v36 = vadd.f32 %v301_v34, %v1046_v4  ;;  %876 = vmatprep.subr.bf16.mxu1 %v847_v42 }
 0x1ee   :  { %738 = vmatprep.mubr.f32.mxu1 %v304_v35 }
 0x1ef   :  { %739 = vmatmul.mubr.f32.gmra.mrb[2].mxu1 %v305_v36 }
 0x1f0   :  { %884 = vmatpush3.bf16.msra.mxu1 %v847_v42 }
 0x1f1   :  { %877 = vmatprep.subr.bf16.mxu1 %v851_v45 }
 0x1f4   :  { %885 = vmatpush3.bf16.msra.mxu1 %v851_v45 }
 0x1f5   :  { %878 = vmatprep.subr.bf16.mxu1 %v855_v48 }
 0x1f8   :  { %886 = vmatpush3.bf16.msra.mxu1 %v855_v48 }
 0x1f9   :  { %879 = vmatprep.subr.bf16.mxu1 %v859_v51 }
 0x1fc   :  { %887 = vmatpush3.bf16.msra.mxu1 %v859_v51 }
 0x1fd   :  { %880 = vmatprep.subr.bf16.mxu1 %v863_v54 }
 0x200   :  { %888 = vmatpush3.bf16.msra.mxu1 %v863_v54 }
 0x201   :  { %881 = vmatprep.subr.bf16.mxu1 %v867_v58 }
 0x204   :  { %889 = vmatpush3.bf16.msra.mxu1 %v867_v58 }
 0x205   :  { %882 = vmatprep.subr.bf16.mxu1 %v871_v2 }
 0x208   :  { %890 = vmatpush3.bf16.msra.mxu1 %v871_v2 }
 0x2bd   :  { %v737_v59 = vpop.f32.mrb[0].mxu1 }
 0x2be   :  { %v409_v62 = vmax.f32 %v737_v59, 0.0  ;;  %v389_v63 = vpop.f32.mrb[1].mxu1 }
 0x2bf   :  { %v408_v3 = vmax.f32 %v389_v63, 0.0 }
 0x2c0   :  { %v413_v5 = vrot.slane %v409_v62, 7  ;;  %v425_v7 = vrot.slane %v409_v62, 1  ;;  %438 = vrot.lane.b32.xlu0 %v409_v62, %s949_s28 }
 0x2c1   :  { %v412_v0 = vrot.slane %v408_v3, 7  ;;  %v424_v8 = vrot.slane %v408_v3, 1 }
 0x2c2   :  { %v740_v9 = vpop.f32.mrb[2].mxu1 }
 0x2c3   :  { %v411_v10 = vmax.f32 %v740_v9, 0.0  ;;  %v399_v11 = vpop.f32.mrb[3].mxu1  ;;  %v430_v13 = vsel %vm112_vm0, %v424_v8, %v425_v7  ;;  %v418_v14 = vsel %vm99_vm1, %v412_v0, %v413_v5 }
 0x2c4   :  { %v410_v12 = vmax.f32 %v399_v11, 0.0  ;;  %436 = vrot.lane.b32.xlu0 %v408_v3, %s949_s28 }
 0x2c5   :  { %v415_v15 = vrot.slane %v411_v10, 7  ;;  %v427_v16 = vrot.slane %v411_v10, 1  ;;  %442 = vrot.lane.b32.xlu1 %v411_v10, %s949_s28 }
 0x2c6   :  { %v414_v17 = vrot.slane %v410_v12, 7  ;;  %v426_v18 = vrot.slane %v410_v12, 1 }
 0x2c7   :  { %v431_v19 = vsel %vm112_vm0, %v427_v16, %v424_v8  ;;  %v419_v20 = vsel %vm99_vm1, %v415_v15, %v412_v0 }
 0x2c8   :  { %v429_v22 = vsel %vm112_vm0, %v425_v7, %v426_v18  ;;  %v428_v23 = vsel %vm112_vm0, %v426_v18, %v427_v16  ;;  %448 = vrot.lane.b32.xlu0 %v430_v13, %s950_s0  ;;  %v416_v24 = vsel %vm99_vm1, %v414_v17, %v415_v15  ;;  %v417_v25 = vsel %vm99_vm1, %v413_v5, %v414_v17 }
 0x2c9   :  { %440 = vrot.lane.b32.xlu1 %v410_v12, %s949_s28  ;;  %v433_v26 = vsel %vm1001_vm2, %v429_v22, 0.0  ;;  %v435_v27 = vsel %vm1019_vm3, %v431_v19, 0.0  ;;  %v420_v31 = vsel %vm1038_vm4, %v419_v20, 0.0  ;;  %v422_v35 = vsel %vm1048_vm6, %v417_v25, 0.0 }
 0x2cc   :  { %450 = vrot.lane.b32.xlu0 %v433_v26, %s950_s0 }
 0x2cd   :  { %452 = vrot.lane.b32.xlu1 %v428_v23, %s950_s0 }
 0x2d1   :  { %454 = vrot.lane.b32.xlu1 %v435_v27, %s950_s0 }
 0x332   :  { %v439_v28 = vpop.permute.xlu0 %438 }
 0x333   :  { %v445_v36 = vadd.f32 %v439_v28, %v418_v14 }
 0x336   :  { %v437_v29 = vpop.permute.xlu0 %436 }
 0x337   :  { %v443_v30 = vpop.permute.xlu1 %442  ;;  %v444_v1 = vadd.f32 %v437_v29, %v420_v31 }
 0x338   :  { %v447_v42 = vadd.f32 %v443_v30, %v416_v24 }
 0x33a   :  { %v449_v33 = vpop.permute.xlu0 %448 }
 0x33b   :  { %v441_v34 = vpop.permute.xlu1 %440  ;;  %v456_v21 = vadd.f32 %v449_v33, %v444_v1 }
 0x33c   :  { %v446_v32 = vadd.f32 %v441_v34, %v422_v35 }
 0x33d   :  { %v460_v37 = vadd.f32 %v456_v21, %v1046_v4 }
 0x33e   :  { %v451_v38 = vpop.permute.xlu0 %450 }
 0x33f   :  { %v453_v39 = vpop.permute.xlu1 %452  ;;  %v457_v40 = vadd.f32 %v451_v38, %v445_v36  ;;  %773 = vmatprep.mubr.f32.mxu0 %v460_v37 }
 0x340   :  { %v458_v41 = vadd.f32 %v453_v39, %v446_v32 }
 0x341   :  { %v461_v55 = vadd.f32 %v457_v40, %v1046_v4 }
 0x342   :  { %v462_v43 = vadd.f32 %v458_v41, %v1046_v4 }
 0x343   :  { %v455_v44 = vpop.permute.xlu1 %454  ;;  %774 = vmatmul.mubr.f32.vlgmr.msra.gmra.mrb[4].mxu0 %v461_v55 }
 0x344   :  { %v459_v45 = vadd.f32 %v455_v44, %v447_v42  ;;  %776 = vmatprep.mubr.f32.mxu1 %v462_v43 }
 0x346   :  { %v463_v6 = vadd.f32 %v459_v45, %v1046_v4 }
 0x348   :  { %777 = vmatmul.mubr.f32.vlgmr.msra.gmra.mrb[4].mxu1 %v463_v6 }
 0x416   :  { %v775_v46 = vpop.f32.mrb[4].mxu0 }
 0x417   :  { %v567_v47 = vmax.f32 %v775_v46, 0.0  ;;  %v547_v48 = vpop.f32.mrb[5].mxu0 }
 0x418   :  { %v566_v49 = vmax.f32 %v547_v48, 0.0 }
 0x41a   :  { %v570_v50 = vmax.f32 %v566_v49, %v567_v47 }
 0x41b   :  { %v778_v51 = vpop.f32.mrb[4].mxu1 }
 0x41c   :  { %v569_v52 = vmax.f32 %v778_v51, 0.0  ;;  %v557_v53 = vpop.f32.mrb[5].mxu1  ;;  %v571_v54 = vrot.slane %v570_v50, 4 }
 0x41d   :  { %v568_v56 = vmax.f32 %v557_v53, 0.0 }
 0x41e   :  { %v572_v57 = vmax.f32 %v570_v50, %v571_v54 }
 0x41f   :  { %v577_v58 = vmax.f32 %v568_v56, %v569_v52 }
 0x420   :  { %v573_v59 = vrot.slane %v572_v57, 2 }
 0x421   :  { %v578_v60 = vrot.slane %v577_v58, 4 }
 0x422   :  { %v574_v61 = vmax.f32 %v572_v57, %v573_v59 }
 0x423   :  { %v579_v62 = vmax.f32 %v577_v58, %v578_v60 }
 0x424   :  { %v575_v2 = vrot.slane %v574_v61, 1 }
 0x425   :  { %v580_v63 = vrot.slane %v579_v62, 2 }
 0x426   :  { %v576_v5 = vmax.f32 %v574_v61, %v575_v2 }
 0x427   :  { %v581_v4 = vmax.f32 %v579_v62, %v580_v63 }
 0x429   :  { %v582_v3 = vrot.slane %v581_v4, 1 }
 0x42b   :  { %v583_v7 = vmax.f32 %v581_v4, %v582_v3 }
 0x42d   :  { %v587_v0 = vsel %vm586_vm7, %v583_v7, %v576_v5 }
 0x42e   :  { %589 = vst [vmem:[#allocation5] sm:$0x3] %v587_v0 }
 0x42f   :  { %931 = shalt.err (!%p928_p12)
}
 0x430   :  { %s932_s8 = scalar_lea.hbm %s1145_s2, 32 }
 0x431   :  { %p933_p13 = scmp.ne.s32.totalorder %s1145_s2, %s932_s8  ;;  %p936_p0 = scmp.lt.u32.totalorder %s932_s8, %s1145_s2 }
 0x433   :  { %p938_p1 = pnand %p936_p0, %p933_p13 }
 0x435   :  { %941 = shalt.err (!%p938_p1)
}
 0x436   :  { %599 = dma.vmem_to_hbm [thread:$0]  %s597_s4, 32, %s1145_s2, [#allocation4]  }
 0x437   :  { %944 = dma.done.wait [#allocation4], 32  }
 0x438   :  { %945 = vsyncadd [#allocation4], 4294967264 }
 0x439   :  { %603 = vsyncpa [#allocation3], 1 }
 0x43a   :  { %604 = vsyncpa [#allocation4], 1 }

</bundles_post_ra>
